<compile_context>
chip_gen: v7x
topology: tpu7x:2x2x1
jax: 0.10.0
libtpu: 0.0.40
codegen_flags: <defaults>
</compile_context>

<pallas_src>
import jax
import jax.numpy as jnp
from jax.experimental import pallas as pl
from jax.experimental.pallas import tpu as pltpu

EPS = 1e-5  # nn.BatchNorm2d default


# ---------------------------------------------------------------------------
# Kernel bodies (layout: channels on sublanes, spatial pixels on lanes)
# ---------------------------------------------------------------------------
def _add_conv1_kernel(x1_ref, x2_ref, w1t_ref, b1_ref,
                      y1_ref, mean1_ref, m21_ref, pool_ref):
    """xa = x1+x2 ; y1 = W1ᵀ@xa + b1 (bf16 out) ; per-tile y1 (mean,M2), xa pool sum."""
    xa = x1_ref[0].astype(jnp.float32) + x2_ref[0].astype(jnp.float32)   # (T, tM)
    y = jnp.dot(w1t_ref[...], xa.astype(jnp.bfloat16),
                preferred_element_type=jnp.float32) + b1_ref[...]        # (I, tM) f32
    y1_ref[...] = y.astype(y1_ref.dtype)[None]                           # bf16, lane-dense

    m = jnp.mean(y, axis=-1, keepdims=True)                              # (I, 1)
    d = y - m
    mean1_ref[...] = m[None, None]                                       # (1,1,I,1)
    m21_ref[...] = jnp.sum(d * d, axis=-1, keepdims=True)[None, None]
    pool_ref[...] = jnp.sum(xa, axis=-1, keepdims=True)[None, None]      # (1,1,T,1)


def _y2_from_y1(y1_bf16, a1_ref, c1_ref, w2t_ref, b2_ref):
    """Shared helper: y2 = W2ᵀ @ ReLU(BN1(y1)) + b2 (BN1 folded into a1/c1)."""
    z = jnp.maximum(y1_bf16.astype(jnp.float32) * a1_ref[...] + c1_ref[...], 0.0)
    return jnp.dot(w2t_ref[...], z.astype(jnp.bfloat16),
                   preferred_element_type=jnp.float32) + b2_ref[...]


def _conv2_stats_kernel(y1_ref, a1_ref, c1_ref, w2t_ref, b2_ref,
                        mean2_ref, m22_ref):
    """Per-tile (mean, M2) of y2; y2 itself is never written to HBM."""
    y2 = _y2_from_y1(y1_ref[0], a1_ref, c1_ref, w2t_ref, b2_ref)         # (T, tM)
    m = jnp.mean(y2, axis=-1, keepdims=True)
    d = y2 - m
    mean2_ref[...] = m[None, None]
    m22_ref[...] = jnp.sum(d * d, axis=-1, keepdims=True)[None, None]


def _final_kernel(y1_ref, x1_ref, x2_ref, a1_ref, c1_ref, w2t_ref, b2_ref,
                  a2_ref, c2_ref, xg_ref, o_ref):
    """Recompute y2, apply BN2, add global attention, sigmoid gate, fuse x1/x2."""
    y2 = _y2_from_y1(y1_ref[0], a1_ref, c1_ref, w2t_ref, b2_ref)         # (T, tM)
    wei = jax.nn.sigmoid(y2 * a2_ref[...] + c2_ref[...] + xg_ref[0])     # xg (T,1) bcast
    x1 = x1_ref[0].astype(jnp.float32)
    x2 = x2_ref[0].astype(jnp.float32)
    out = 2.0 * x1 * wei + 2.0 * x2 * (1.0 - wei)
    o_ref[...] = out.astype(o_ref.dtype)[None]


# ---------------------------------------------------------------------------
# Tile sizing
# ---------------------------------------------------------------------------
def _auto_spatial_tile(n_pix, T, I, x_bytes, budget_bytes=8 << 20):
    """Largest lane-dense spatial tile whose double-buffered working set fits
    a conservative VMEM budget (sized against v5e's 16 MiB scoped default;
    v6e 32 MiB / v7x 64 MiB-physical have even more headroom)."""
    # Heaviest pass is pass 3: streams y1(bf16) + x1 + x2 + out, double-buffered,
    # plus in-kernel f32 temporaries (~8*I + 16*T bytes per pixel, over-estimate).
    per_pix = 2 * (2 * I + 3 * x_bytes * T) + 8 * I + 16 * T
    cap = max(128, budget_bytes // per_pix)
    cands = [d for d in range(128, n_pix + 1, 128) if n_pix % d == 0]
    cands.append(n_pix)                                   # full-extent always legal
    fit = [c for c in cands if c <= cap]
    return max(fit) if fit else min(cands)


# ---------------------------------------------------------------------------
# Wrapper
# ---------------------------------------------------------------------------
def smff_forward(x1_nchw, x2_nchw, params, *, spatial_tile=None):
    B, T, H, W = x1_nchw.shape
    n_pix = H * W
    I = params["lw1"].shape[1]                           # inter_channels
    x_dtype = x1_nchw.dtype
    x_bytes = x1_nchw.dtype.itemsize

    # Free reshapes only — no transposes, no dtype changes on the big tensors.
    x1 = x1_nchw.reshape(B, T, n_pix)
    x2 = x2_nchw.reshape(B, T, n_pix)

    tM = spatial_tile if spatial_tile is not None else _auto_spatial_tile(
        n_pix, T, I, x_bytes)
    assert n_pix % tM == 0 and (tM % 128 == 0 or tM == n_pix), (n_pix, tM)
    nM = n_pix // tM
    grid = (B, nM)

    # MXU operands pre-transposed/pre-cast; biases / BN params stay f32.
    w1t = params["lw1"].T.astype(jnp.bfloat16)           # (I, T)
    w2t = params["lw2"].T.astype(jnp.bfloat16)           # (T, I)
    b1 = params["lb1"].reshape(I, 1).astype(jnp.float32)
    b2 = params["lb2"].reshape(T, 1).astype(jnp.float32)

    x_spec = pl.BlockSpec((1, T, tM), lambda b, m: (b, 0, m))
    y1_spec = pl.BlockSpec((1, I, tM), lambda b, m: (b, 0, m))

    def rep(shape):                                      # replicated parameter block
        return pl.BlockSpec(shape, lambda b, m: (0,) * len(shape))

    def stat_spec(C):                                    # per-(sample, tile) partials
        return pl.BlockSpec((1, 1, C, 1), lambda b, m: (b, m, 0, 0))

    par = pltpu.CompilerParams(dimension_semantics=("parallel", "parallel"))

    # ---- pass 1: add + conv1 + fused per-tile stats / pool partials ---------
    y1, mean1_p, m21_p, pool_p = pl.pallas_call(
        _add_conv1_kernel,
        out_shape=(jax.ShapeDtypeStruct((B, I, n_pix), jnp.bfloat16),
                   jax.ShapeDtypeStruct((B, nM, I, 1), jnp.float32),
                   jax.ShapeDtypeStruct((B, nM, I, 1), jnp.float32),
                   jax.ShapeDtypeStruct((B, nM, T, 1), jnp.float32)),
        grid=grid,
        in_specs=[x_spec, x_spec, rep((I, T)), rep((I, 1))],
        out_specs=(y1_spec, stat_spec(I), stat_spec(I), stat_spec(T)),
        compiler_params=par,
    )(x1, x2, w1t, b1)

    # ---- BN1 fold: combine per-tile (mean, M2) partials (Chan, equal counts) --
    n_total = float(B * n_pix)
    mean1 = jnp.mean(mean1_p[..., 0], axis=(0, 1))                       # (I,)
    m2_1 = (jnp.sum(m21_p[..., 0], axis=(0, 1))
            + tM * jnp.sum((mean1_p[..., 0] - mean1) ** 2, axis=(0, 1)))
    var1 = jnp.maximum(m2_1 / n_total, 0.0)
    inv1 = jax.lax.rsqrt(var1 + EPS)
    a1 = (params["lg1"] * inv1).reshape(I, 1).astype(jnp.float32)
    c1 = (params["lbt1"] - mean1 * params["lg1"] * inv1).reshape(I, 1).astype(jnp.float32)

    # ---- global attention branch on pooled (B, T) features: plain JAX --------
    # Negligible FLOPs; avoids an extra pallas_call launch.
    pooled = jnp.sum(pool_p[..., 0], axis=1) / float(n_pix)              # (B, T)

    def _bn_batch(y, gamma, beta):                       # training-mode BN over batch
        m = jnp.mean(y, axis=0, keepdims=True)
        v = jnp.mean((y - m) ** 2, axis=0, keepdims=True)
        return (y - m) * jax.lax.rsqrt(v + EPS) * gamma + beta

    g1 = pooled @ params["gw1"] + params["gb1"]
    g1 = jnp.maximum(_bn_batch(g1, params["gg1"], params["gbt1"]), 0.0)
    g2 = g1 @ params["gw2"] + params["gb2"]
    xg = _bn_batch(g2, params["gg2"], params["gbt2"])                    # (B, T)
    xg3 = xg.astype(jnp.float32)[:, :, None]                             # (B, T, 1)

    # ---- pass 2: per-tile (mean, M2) of y2 (y2 not materialized in HBM) ------
    mean2_p, m22_p = pl.pallas_call(
        _conv2_stats_kernel,
        out_shape=(jax.ShapeDtypeStruct((B, nM, T, 1), jnp.float32),
                   jax.ShapeDtypeStruct((B, nM, T, 1), jnp.float32)),
        grid=grid,
        in_specs=[y1_spec, rep((I, 1)), rep((I, 1)), rep((T, I)), rep((T, 1))],
        out_specs=(stat_spec(T), stat_spec(T)),
        compiler_params=par,
    )(y1, a1, c1, w2t, b2)

    mean2 = jnp.mean(mean2_p[..., 0], axis=(0, 1))                       # (T,)
    m2_2 = (jnp.sum(m22_p[..., 0], axis=(0, 1))
            + tM * jnp.sum((mean2_p[..., 0] - mean2) ** 2, axis=(0, 1)))
    var2 = jnp.maximum(m2_2 / n_total, 0.0)
    inv2 = jax.lax.rsqrt(var2 + EPS)
    a2 = (params["lg2"] * inv2).reshape(T, 1).astype(jnp.float32)
    c2 = (params["lbt2"] - mean2 * params["lg2"] * inv2).reshape(T, 1).astype(jnp.float32)

    # ---- pass 3: recompute y2, BN2 + xg + sigmoid gate + fuse x1/x2 ----------
    out = pl.pallas_call(
        _final_kernel,
        out_shape=jax.ShapeDtypeStruct((B, T, n_pix), x_dtype),
        grid=grid,
        in_specs=[y1_spec, x_spec, x_spec,
                  rep((I, 1)), rep((I, 1)), rep((T, I)), rep((T, 1)),
                  rep((T, 1)), rep((T, 1)),
                  pl.BlockSpec((1, T, 1), lambda b, m: (b, 0, 0))],
        out_specs=x_spec,
        compiler_params=par,
    )(y1, x1, x2, a1, c1, w2t, b2, a2, c2, xg3)

    return out.reshape(B, T, H, W)                                        # NCHW, free


# ---------------------------------------------------------------------------
# Pure-JAX reference (f32, NCHW) for a correctness check
# ---------------------------------------------------------------------------
def smff_reference(x1, x2, params):
    xa = x1 + x2

    def bn(y, gamma, beta, axes, pshape):
        m = jnp.mean(y, axis=axes, keepdims=True)
        v = jnp.mean((y - m) ** 2, axis=axes, keepdims=True)
        return ((y - m) * jax.lax.rsqrt(v + EPS) * gamma.reshape(pshape)
                + beta.reshape(pshape))

    y1 = (jnp.einsum("bthw,ti->bihw", xa, params["lw1"])
          + params["lb1"][None, :, None, None])
    y1 = jnp.maximum(bn(y1, params["lg1"], params["lbt1"], (0, 2, 3), (1, -1, 1, 1)), 0.0)
    y2 = (jnp.einsum("bihw,it->bthw", y1, params["lw2"])
          + params["lb2"][None, :, None, None])
    xl = bn(y2, params["lg2"], params["lbt2"], (0, 2, 3), (1, -1, 1, 1))

    p = jnp.mean(xa, axis=(2, 3))                                         # (B, T)
    g1 = p @ params["gw1"] + params["gb1"]
    g1 = jnp.maximum(bn(g1, params["gg1"], params["gbt1"], (0,), (1, -1)), 0.0)
    g2 = g1 @ params["gw2"] + params["gb2"]
    xg = bn(g2, params["gg2"], params["gbt2"], (0,), (1, -1))

    wei = jax.nn.sigmoid(xl + xg[:, :, None, None])
    return 2.0 * x1 * wei + 2.0 * x2 * (1.0 - wei)


def init_params(key, T, C, r):
    I = C // r
    ks = jax.random.split(key, 16)
    n = lambda k, s: jax.random.normal(k, s, jnp.float32)
    return {
        # local_att: Conv(T->I), BN(I), ReLU, Conv(I->T), BN(T)
        "lw1": 0.05 * n(ks[0], (T, I)), "lb1": 0.05 * n(ks[1], (I,)),
        "lg1": 1.0 + 0.1 * n(ks[2], (I,)), "lbt1": 0.1 * n(ks[3], (I,)),
        "lw2": 0.05 * n(ks[4], (I, T)), "lb2": 0.05 * n(ks[5], (T,)),
        "lg2": 1.0 + 0.1 * n(ks[6], (T,)), "lbt2": 0.1 * n(ks[7], (T,)),
        # global_att: GAP, Conv(T->I), BN(I), ReLU, Conv(I->T), BN(T)
        "gw1": 0.05 * n(ks[8], (T, I)), "gb1": 0.05 * n(ks[9], (I,)),
        "gg1": 1.0 + 0.1 * n(ks[10], (I,)), "gbt1": 0.1 * n(ks[11], (I,)),
        "gw2": 0.05 * n(ks[12], (I, T)), "gb2": 0.05 * n(ks[13], (T,)),
        "gg2": 1.0 + 0.1 * n(ks[14], (T,)), "gbt2": 0.1 * n(ks[15], (T,)),
    }


if __name__ == "__main__":
    key = jax.random.PRNGKey(0)
    k1, k2, k3 = jax.random.split(key, 3)

    B = 2
    T_channels = 128          # lane-friendly channel count
    C_channels = 128
    r = 4                     # inter_channels = 32
    H = W = 16

    x1 = jax.random.normal(k1, (B, T_channels, H, W), jnp.float32)
    x2 = jax.random.normal(k2, (B, T_channels, H, W), jnp.float32)
    params = init_params(k3, T_channels, C_channels, r)

    ref = smff_reference(x1, x2, params)

    # Auto-sized spatial tile (single tile at this size).
    out = jax.block_until_ready(smff_forward(x1, x2, params))
    assert out.shape == (B, T_channels, H, W), out.shape
    assert bool(jnp.all(jnp.isfinite(out)))
    err = float(jnp.max(jnp.abs(out - ref)))
    assert err < 1e-1, f"max abs error vs reference (auto tile): {err}"

    # Forced smaller tile: exercises the multi-tile partial-stat combine path.
    out2 = jax.block_until_ready(smff_forward(x1, x2, params, spatial_tile=128))
    err2 = float(jnp.max(jnp.abs(out2 - ref)))
    assert err2 < 1e-1, f"max abs error vs reference (tiled): {err2}"

    print("KERNEL_OK")
</pallas_src>

<mosaic_0001>
module attributes {stable_mosaic.version = 11 : i64} {
  func.func @_add_conv1_kernel(%arg0: i32, %arg1: i32, %arg2: memref<1x128x256xf32, #tpu.memory_space<vmem>>, %arg3: memref<1x128x256xf32, #tpu.memory_space<vmem>>, %arg4: memref<32x128xbf16, #tpu.memory_space<vmem>>, %arg5: memref<32x1xf32, #tpu.memory_space<vmem>>, %arg6: memref<1x32x256xbf16, #tpu.memory_space<vmem>>, %arg7: memref<1x1x32x1xf32, #tpu.memory_space<vmem>>, %arg8: memref<1x1x32x1xf32, #tpu.memory_space<vmem>>, %arg9: memref<1x1x128x1xf32, #tpu.memory_space<vmem>>) attributes {dimension_semantics = [#tpu.dimension_semantics<parallel>, #tpu.dimension_semantics<parallel>], iteration_bounds = array<i64: 2, 1>, scalar_prefetch = 0 : i64, scratch_operands = 0 : i64, tpu.core_type = #tpu.core_type<tc>, window_params = [{transform_indices = @transform_0, window_bounds = array<i64: 1, 128, 256>}, {transform_indices = @transform_1, window_bounds = array<i64: 1, 128, 256>}, {pipeline_mode = #tpu.pipeline_mode<synchronous>, transform_indices = @transform_2, window_bounds = array<i64: 32, 128>}, {pipeline_mode = #tpu.pipeline_mode<synchronous>, transform_indices = @transform_3, window_bounds = array<i64: 32, 1>}, {transform_indices = @transform_4, window_bounds = array<i64: 1, 32, 256>}, {transform_indices = @transform_5, window_bounds = array<i64: 1, 1, 32, 1>}, {transform_indices = @transform_6, window_bounds = array<i64: 1, 1, 32, 1>}, {transform_indices = @transform_7, window_bounds = array<i64: 1, 1, 128, 1>}]} {
    %c0 = arith.constant 0 : index
    %c0_0 = arith.constant 0 : index
    %c0_1 = arith.constant 0 : index
    %0 = vector.load %arg2[%c0, %c0_0, %c0_1] : memref<1x128x256xf32, #tpu.memory_space<vmem>>, vector<1x128x256xf32>
    %1 = vector.shape_cast %0 : vector<1x128x256xf32> to vector<128x256xf32>
    %c0_2 = arith.constant 0 : index
    %c0_3 = arith.constant 0 : index
    %c0_4 = arith.constant 0 : index
    %2 = vector.load %arg3[%c0_2, %c0_3, %c0_4] : memref<1x128x256xf32, #tpu.memory_space<vmem>>, vector<1x128x256xf32>
    %3 = vector.shape_cast %2 : vector<1x128x256xf32> to vector<128x256xf32>
    %4 = arith.addf %1, %3 : vector<128x256xf32>
    %c0_5 = arith.constant 0 : index
    %c0_6 = arith.constant 0 : index
    %5 = vector.load %arg4[%c0_5, %c0_6] : memref<32x128xbf16, #tpu.memory_space<vmem>>, vector<32x128xbf16>
    %6 = arith.truncf %4 : vector<128x256xf32> to vector<128x256xbf16>
    %cst = arith.constant dense<0.000000e+00> : vector<32x256xf32>
    %7 = tpu.matmul %5, %6, %cst {dimension_numbers = #tpu.dot_dimension_numbers<[1], [0], [0], [1], [0, 0, 1, 1], [], []>} : vector<32x128xbf16>, vector<128x256xbf16>, vector<32x256xf32> -> vector<32x256xf32>
    %c0_7 = arith.constant 0 : index
    %c0_8 = arith.constant 0 : index
    %8 = vector.load %arg5[%c0_7, %c0_8] : memref<32x1xf32, #tpu.memory_space<vmem>>, vector<32x1xf32>
    %9 = vector.broadcast %8 : vector<32x1xf32> to vector<32x256xf32>
    %10 = arith.addf %7, %9 : vector<32x256xf32>
    %11 = arith.truncf %10 : vector<32x256xf32> to vector<32x256xbf16>
    %12 = vector.shape_cast %11 : vector<32x256xbf16> to vector<1x32x256xbf16>
    %c0_9 = arith.constant 0 : index
    %c0_10 = arith.constant 0 : index
    %c0_11 = arith.constant 0 : index
    %13 = vector.load %arg6[%c0_9, %c0_10, %c0_11] : memref<1x32x256xbf16, #tpu.memory_space<vmem>>, vector<1x32x256xbf16>
    tpu.vector_store %arg6[%c0_9, %c0_10, %c0_11], %12 {strides = array<i32>} : memref<1x32x256xbf16, #tpu.memory_space<vmem>>, vector<1x32x256xbf16>,
    %cst_12 = arith.constant dense<0.000000e+00> : vector<32xf32>
    %14 = vector.multi_reduction <add>, %10, %cst_12 [1] : vector<32x256xf32> to vector<32xf32>
    %15 = vector.shape_cast %14 : vector<32xf32> to vector<32x1xf32>
    %cst_13 = arith.constant 2.560000e+02 : f32
    %16 = vector.broadcast %cst_13 : f32 to vector<32x1xf32>
    %17 = arith.divf %15, %16 : vector<32x1xf32>
    %18 = vector.broadcast %17 : vector<32x1xf32> to vector<32x256xf32>
    %19 = arith.subf %10, %18 : vector<32x256xf32>
    %20 = vector.shape_cast %17 : vector<32x1xf32> to vector<1x1x32x1xf32>
    %c0_14 = arith.constant 0 : index
    %c0_15 = arith.constant 0 : index
    %c0_16 = arith.constant 0 : index
    %c0_17 = arith.constant 0 : index
    %21 = vector.load %arg7[%c0_14, %c0_15, %c0_16, %c0_17] : memref<1x1x32x1xf32, #tpu.memory_space<vmem>>, vector<1x1x32x1xf32>
    tpu.vector_store %arg7[%c0_14, %c0_15, %c0_16, %c0_17], %20 {strides = array<i32>} : memref<1x1x32x1xf32, #tpu.memory_space<vmem>>, vector<1x1x32x1xf32>,
    %22 = arith.mulf %19, %19 : vector<32x256xf32>
    %cst_18 = arith.constant dense<0.000000e+00> : vector<32xf32>
    %23 = vector.multi_reduction <add>, %22, %cst_18 [1] : vector<32x256xf32> to vector<32xf32>
    %24 = vector.shape_cast %23 : vector<32xf32> to vector<32x1xf32>
    %25 = vector.shape_cast %24 : vector<32x1xf32> to vector<1x1x32x1xf32>
    %c0_19 = arith.constant 0 : index
    %c0_20 = arith.constant 0 : index
    %c0_21 = arith.constant 0 : index
    %c0_22 = arith.constant 0 : index
    %26 = vector.load %arg8[%c0_19, %c0_20, %c0_21, %c0_22] : memref<1x1x32x1xf32, #tpu.memory_space<vmem>>, vector<1x1x32x1xf32>
    tpu.vector_store %arg8[%c0_19, %c0_20, %c0_21, %c0_22], %25 {strides = array<i32>} : memref<1x1x32x1xf32, #tpu.memory_space<vmem>>, vector<1x1x32x1xf32>,
    %cst_23 = arith.constant dense<0.000000e+00> : vector<128xf32>
    %27 = vector.multi_reduction <add>, %4, %cst_23 [1] : vector<128x256xf32> to vector<128xf32>
    %28 = vector.shape_cast %27 : vector<128xf32> to vector<128x1xf32>
    %29 = vector.shape_cast %28 : vector<128x1xf32> to vector<1x1x128x1xf32>
    %c0_24 = arith.constant 0 : index
    %c0_25 = arith.constant 0 : index
    %c0_26 = arith.constant 0 : index
    %c0_27 = arith.constant 0 : index
    %30 = vector.load %arg9[%c0_24, %c0_25, %c0_26, %c0_27] : memref<1x1x128x1xf32, #tpu.memory_space<vmem>>, vector<1x1x128x1xf32>
    tpu.vector_store %arg9[%c0_24, %c0_25, %c0_26, %c0_27], %29 {strides = array<i32>} : memref<1x1x128x1xf32, #tpu.memory_space<vmem>>, vector<1x1x128x1xf32>,
    return
  }
  func.func @transform_0(%arg0: i32, %arg1: i32) -> (i32, i32, i32) {
    %c0_i32 = arith.constant 0 : i32
    %c0_i32_0 = arith.constant 0 : i32
    return %arg0, %c0_i32, %arg1 : i32, i32, i32
  }
  func.func @transform_1(%arg0: i32, %arg1: i32) -> (i32, i32, i32) {
    %c0_i32 = arith.constant 0 : i32
    %c0_i32_0 = arith.constant 0 : i32
    return %arg0, %c0_i32, %arg1 : i32, i32, i32
  }
  func.func @transform_2(%arg0: i32, %arg1: i32) -> (i32, i32) {
    %c0_i32 = arith.constant 0 : i32
    %c0_i32_0 = arith.constant 0 : i32
    %c0_i32_1 = arith.constant 0 : i32
    return %c0_i32, %c0_i32_0 : i32, i32
  }
  func.func @transform_3(%arg0: i32, %arg1: i32) -> (i32, i32) {
    %c0_i32 = arith.constant 0 : i32
    %c0_i32_0 = arith.constant 0 : i32
    %c0_i32_1 = arith.constant 0 : i32
    return %c0_i32, %c0_i32_0 : i32, i32
  }
  func.func @transform_4(%arg0: i32, %arg1: i32) -> (i32, i32, i32) {
    %c0_i32 = arith.constant 0 : i32
    %c0_i32_0 = arith.constant 0 : i32
    return %arg0, %c0_i32, %arg1 : i32, i32, i32
  }
  func.func @transform_5(%arg0: i32, %arg1: i32) -> (i32, i32, i32, i32) {
    %c0_i32 = arith.constant 0 : i32
    %c0_i32_0 = arith.constant 0 : i32
    %c0_i32_1 = arith.constant 0 : i32
    return %arg0, %arg1, %c0_i32, %c0_i32_0 : i32, i32, i32, i32
  }
  func.func @transform_6(%arg0: i32, %arg1: i32) -> (i32, i32, i32, i32) {
    %c0_i32 = arith.constant 0 : i32
    %c0_i32_0 = arith.constant 0 : i32
    %c0_i32_1 = arith.constant 0 : i32
    return %arg0, %arg1, %c0_i32, %c0_i32_0 : i32, i32, i32, i32
  }
  func.func @transform_7(%arg0: i32, %arg1: i32) -> (i32, i32, i32, i32) {
    %c0_i32 = arith.constant 0 : i32
    %c0_i32_0 = arith.constant 0 : i32
    %c0_i32_1 = arith.constant 0 : i32
    return %arg0, %arg1, %c0_i32, %c0_i32_0 : i32, i32, i32, i32
  }
}

</mosaic_0001>

<bundles_post_ra>
// kernel: tpu_custom_call.1
= control target key start
LH: loop header
LB: loop body
LE: loop exit
PB: predicated region body
PF: predicated region fallthrough
CT: control target
= control target key end

     0   :  { %s1958_s0 = inlined_call_operand.hbm [shape: f32[2,128,256], index: 0, kind: input, shape index: {}]   ;;  %s1959_s1 = inlined_call_operand.hbm [shape: f32[2,128,256], index: 1, kind: input, shape index: {}]   ;;  %s1960_s2 = inlined_call_operand.vmem [shape: bf16[32,128], index: 2, kind: input, shape index: {}]   ;;  %s1961_s3 = inlined_call_operand.vmem [shape: f32[32,1], index: 3, kind: input, shape index: {}]   ;;  %s1962_s4 = inlined_call_operand.hbm [shape: bf16[2,32,256], index: 4, kind: output, shape index: {0}]   ;;  %s1963_s5 = inlined_call_operand.vmem [shape: f32[2,1,32,1], index: 5, kind: output, shape index: {1}]   ;;  %s1964_s6 = inlined_call_operand.vmem [shape: f32[2,1,32,1], index: 6, kind: output, shape index: {2}]   ;;  %s1965_s7 = inlined_call_operand.vmem [shape: f32[2,1,128,1], index: 7, kind: output, shape index: {3}]  }
   0x1   :  { %1972 = sst [smem:[#allocation13_spill]] %s1958_s0 }
   0x2   :  { %13 = vsyncpa [#allocation3], 0 }
   0x3   :  { %15 = vsyncpa [#allocation3 + $0x1], 0 }
   0x4   :  { %16 = vsyncpa [#allocation6], 0 }
   0x5   :  { %18 = vsyncpa [#allocation6 + $0x1], 0 }
   0x6   :  { %19 = vsyncpa [#allocation4], 0 }
   0x7   :  { %21 = vsyncpa [#allocation4 + $0x1], 0  ;;  %s1398_s24 = smov 0   ;;  %s1400_s25 = smov 0  }
   0x8   :  { %s1402_s26 = smov 0   ;;  %s1404_s27 = smov 0  }
   0x9   :  { %s1406_s28 = smov 0   ;;  %s1408_s29 = smov 0  }
   0xa LB: > { %s1069_s30 = sadd.s32 4294967295, %s1348_s29   ;;  %s1070_s8 = sadd.s32 4294967294, %s1348_s29   ;;  %s1348_s29 = sphi %s1408_s29, %s27_s29   ;;  %s1344_s28 = sphi %s1406_s28, %s1996_s28   ;;  %s1340_s27 = sphi %s1404_s27, %s1995_s27   ;;  %s1336_s26 = sphi %s1402_s26, %s1994_s26   ;;  %s1332_s25 = sphi %s1400_s25, %s1993_s25   ;;  %s1328_s24 = sphi %s1398_s24, %s1992_s24  }
   0xb   : > { %s39_s9 = sadd.s32 1, %s1344_s28  ;;  %s48_s10 = sadd.s32 1, %s1336_s26 }
   0xc   : > { %p41_p0 = scmp.ge.s32.totalorder %s39_s9, 2  ;;  %p55_p1 = scmp.ne.s32.totalorder %s1336_s26, %s1332_s25 }
   0xd   : > { %p56_p2 = scmp.eq.s32.totalorder %s1348_s29, 0  ;;  %p61_p3 = scmp.ne.s32.totalorder %s1332_s25, %s1328_s24 }
   0xe   : > { %s1998_s9 = smov (%p41_p0, %s39_s9), 0  ;;  %p62_p5 = scmp.eq.s32.totalorder %s1069_s30, 0 }
   0xf   : > { %1973 = sst [smem:[#allocation11_spill]] %s1998_s9  ;;  %p1439_p4 = por %p56_p2, %p55_p1 }
  0x10   : > { %s43_s12 = ssub.s32 %s1344_s28, %s1998_s9  ;;  %p157_p6 = scmp.eq.s32.totalorder %s1069_s30, 1 }
  0x11   : > { %p46_p7 = scmp.eq.s32.totalorder %s43_s12, 0  ;;  %p1445_p8 = por %p62_p5, %p61_p3 }
  0x12   : > { %p1449_p9 = por %p157_p6, %p55_p1  ;;  %p163_p10 = scmp.eq.s32.totalorder %s1070_s8, 1 }
  0x13   : > { %s1975_s13 = scalar_select %p1445_p8, 1, 0 }
  0x14   : > { %s1976_s14 = scalar_select %p1449_p9, 1, 0 }
  0x15   : > { %s1454_s15 = scalar_select %p46_p7, %s1336_s26, %s48_s10  }
  0x16   : > { %p1456_p11 = por %p163_p10, %p61_p3  ;;  %p1143_p13 = scmp.lt.s32.totalorder %s1348_s29, 2 }
  0x17   : > { %1977 = sst [smem:[#allocation12_spill]] %s1454_s15  ;;  %s1463_s17 = sand.u32 1, %s1336_s26  }
  0x18   : > { %s1978_s16 = scalar_select %p1456_p11, 1, 0 }
  0x19   : > { %s1966_s18 = sshll.u32 %s1463_s17, 8  ;;  %s1967_s19 = sshll.u32 %s1344_s28, 12 }
  0x1a   : > { %s1979_s0 = sld [smem:[#allocation13_spill]]  ;;  %s277_s23 = scalar_lea.vmem [#allocation2], %s1966_s18 }
  0x1b   : > { %s286_s30 = sshll.u32 %s277_s23, 4  ;;  %p1480_p0 = pnand %p1143_p13, %p1439_p4  ;;  %s1476_s30 = int_to_ptr.vmem [resolvable:$true] %s286_s30 }
  0x1c   : > { %s274_s10 = scalar_lea.sflag [#allocation3], %s1463_s17 }
  0x1d   : > { %p1204_p3 = pneg %p1480_p0 }
  0x20   : > { %s1472_s22 = scalar_lea.hbm %s1979_s0, %s1967_s19  ;;  %s1207_s11 = scalar_lea.hbm %s1979_s0, 8192 }
  0x21   : > { %s1202_s12 = scalar_lea.hbm %s1472_s22, 4096  ;;  %p1208_p4 = scmp.lt.u32.totalorder %s1472_s22, %s1979_s0 }
  0x22   : > { %p1203_p2 = scmp.ne.s32.totalorder %s1472_s22, %s1202_s12  ;;  %p1209_p7 = scmp.lt.u32.totalorder %s1207_s11, %s1202_s12 }
  0x23   : > { %p1211_p13 = scmp.lt.u32.totalorder %s1202_s12, %s1472_s22 }
  0x24   : > { %p1205_p5 = pnand %p1204_p3, %p1203_p2  ;;  %p1210_p10 = por %p1209_p7, %p1208_p4 }
  0x26   : > { %p1206_p6 = pneg %p1205_p5  ;;  %p1212_p12 = por %p1211_p13, %p1210_p10 }
  0x28   : > { %p1213_p1 = pnand %p1212_p12, %p1206_p6 }
  0x2a   : > { %1216 = shalt.err (!%p1213_p1)
}
  0x2b   : > { %s1217_s19 = scalar_lea.vmem %s1476_s30, 4096  ;;  %s1350_s20 = smov [#allocation2]  }
  0x2c   : > { %p1218_p2 = scmp.ne.s32.totalorder %s1476_s30, %s1217_s19  ;;  %s1222_s21 = sshll.u32 %s1350_s20, 4  ;;  %s1223_s21 = int_to_ptr.vmem [resolvable:$false] %s1222_s21 }
  0x2d   : > { %s1224_s18 = scalar_lea.vmem %s1223_s21, 8192  ;;  %p1225_p9 = scmp.lt.s32.totalorder %s1476_s30, %s1223_s21 }
  0x2e   : > { %p1220_p5 = pnand %p1218_p2, %p1204_p3  ;;  %p1226_p4 = scmp.lt.s32.totalorder %s1224_s18, %s1217_s19 }
  0x30   : > { %p1221_p11 = pneg %p1220_p5  ;;  %p1227_p7 = por %p1226_p4, %p1225_p9 }
  0x32   : > { %p1228_p10 = pnand %p1227_p7, %p1221_p11 }
  0x34   : > { %1231 = shalt.err (!%p1228_p10)
}
  0x35   : > { %s1970_s12 = smov 256   ;;  %s1352_s11 = smov 16  }
  0x36   : > { %1135 = dma.hbm_to_vmem [thread:$0]  (!%p1480_p0), %s1472_s22, 4096, %s1476_s30, %s274_s10, %s1970_s12, %s1970_s12, %s1352_s11  }
  0x37   : > { %p317_p9 = scmp.lt.s32.totalorder %s1348_s29, 3  ;;  %s1981_s19 = sshll.u32 %s1344_s28, 12 }
  0x38   : > { %s1522_s21 = scalar_lea.hbm %s1959_s1, %s1981_s19  ;;  %p1982_p11 = scmp.ge.s32.totalorder %s1348_s29, 1 }
  0x39   : > { %s1984_s0 = sshll.u32 %s1463_s17, 8  ;;  %s297_s22 = scalar_lea.sflag [#allocation6], %s1463_s17 }
  0x3a   : > { %p1526_p12 = pnand %p1982_p11, %p317_p9  ;;  %s300_s9 = scalar_lea.vmem [#allocation5], %s1984_s0 }
  0x3b   : > { %s309_s15 = sshll.u32 %s300_s9, 4  ;;  %s1232_s30 = scalar_lea.hbm %s1522_s21, 4096  ;;  %s1532_s15 = int_to_ptr.vmem [resolvable:$true] %s309_s15 }
  0x3c   : > { %p1233_p1 = scmp.ne.s32.totalorder %s1522_s21, %s1232_s30  ;;  %s1237_s23 = scalar_lea.hbm %s1959_s1, 8192 }
  0x3d   : > { %p1238_p2 = scmp.lt.u32.totalorder %s1522_s21, %s1959_s1  ;;  %p1239_p5 = scmp.lt.u32.totalorder %s1237_s23, %s1232_s30 }
  0x3e   : > { %p1235_p6 = pnand %p1233_p1, %p1204_p3  ;;  %p1241_p7 = scmp.lt.u32.totalorder %s1232_s30, %s1522_s21 }
  0x3f   : > { %p1240_p4 = por %p1239_p5, %p1238_p2 }
  0x40   : > { %p1236_p13 = pneg %p1235_p6 }
  0x41   : > { %p1242_p10 = por %p1241_p7, %p1240_p4 }
  0x43   : > { %p1243_p9 = pnand %p1242_p10, %p1236_p13 }
  0x45   : > { %1246 = shalt.err (!%p1243_p9)
}
  0x46   : > { %s1247_s0 = scalar_lea.vmem %s1532_s15, 4096  ;;  %s1353_s9 = smov [#allocation5]  }
  0x47   : > { %p1248_p11 = scmp.ne.s32.totalorder %s1532_s15, %s1247_s0  ;;  %s1252_s10 = sshll.u32 %s1353_s9, 4  ;;  %s1253_s10 = int_to_ptr.vmem [resolvable:$false] %s1252_s10 }
  0x48   : > { %s1254_s12 = scalar_lea.vmem %s1253_s10, 8192  ;;  %p1255_p8 = scmp.lt.s32.totalorder %s1532_s15, %s1253_s10 }
  0x49   : > { %p1250_p1 = pnand %p1248_p11, %p1204_p3  ;;  %p1256_p2 = scmp.lt.s32.totalorder %s1254_s12, %s1247_s0 }
  0x4b   : > { %p1251_p6 = pneg %p1250_p1  ;;  %p1257_p5 = por %p1256_p2, %p1255_p8 }
  0x4d   : > { %p1258_p4 = pnand %p1257_p5, %p1251_p6 }
  0x4f   : > { %1261 = shalt.err (!%p1258_p4)
}
  0x50   : > { %s1985_s30 = smov 256   ;;  %321 = sbr.rel (%p1526_p12) target bundleno = 652 (0x28c), region = 36 }
  0x51   : > { %1138 = dma.hbm_to_vmem [thread:$0]  (!%p1480_p0), %s1522_s21, 4096, %s1532_s15, %s297_s22, %s1985_s30, %s1985_s30, %s1352_s11  }
  0x52   : > { %s1566_s19 = sand.u32 (!%p1526_p12), 1, %s1332_s25   ;;  %p1986_p8 = scmp.ne.s32.totalorder (!%p1526_p12), %s1975_s13, 0 }
  0x53   : > { %s1080_s23 = sshll.u32 (!%p1526_p12), %s1566_s19, 8  ;;  %s324_s20 = scalar_lea.sflag (!%p1526_p12), [#allocation3], %s1566_s19 }
  0x54   : > { %s1570_s8 = scalar_lea.vmem (!%p1526_p12), [#allocation2], %s1080_s23 }
  0x57   : > { %1315 = dma.done.wait (%p1986_p8), %s324_s20, 4096  }
  0x58   : > { %1317 = vsyncadd (%p1986_p8), %s324_s20, 4294963200  ;;  %s333_s15 = scalar_lea.sflag [#allocation6], %s1566_s19  ;;  %s1577_s17 = scalar_lea.vmem [#allocation5], %s1080_s23 }
  0x59   : > { %1319 = dma.done.wait (%p1986_p8), %s333_s15, 4096  }
  0x5a   : > { %1321 = vsyncadd (%p1986_p8), %s333_s15, 4294963200  ;;  %v1354_v0 = vmov 0   ;;  %v431_v1 = vld [vmem:[%s1570_s8 + $0x8] sm:$0xff]  ;;  %v433_v2 = vld [vmem:[%s1570_s8 + $0x18] sm:$0xff]  ;;  %p402_p0 = scmp.lt.s32.totalorder %s1340_s27, 1  ;;  %vm688_vm0 = vcmask 7168  }
  0x5b   : > { %614 = vmatprep.mubr.bf16.mxu0 %v1354_v0  ;;  %624 = vmatprep.mubr.bf16.mxu1 %v1354_v0  ;;  %v463_v3 = vld [vmem:[%s1577_s17 + $0x8] sm:$0xff]  ;;  %v465_v4 = vld [vmem:[%s1577_s17 + $0x18] sm:$0xff]  ;;  %v430_v6 = vld [vmem:[%s1570_s8] sm:$0xff]  ;;  %s1109_s30 = sshll.u32 %s1340_s27, 9  ;;  %s782_s11 = scalar_lea.sflag [#allocation4], %s1566_s19 }
  0x5c   : > { %1198 = vset.pattern.permute.xlu0 %v1354_v0  ;;  %1199 = vset.pattern.permute.xlu1 %v1354_v0  ;;  %v1587_v5 = vadd.f32 %v463_v3, %v431_v1  ;;  %v432_v7 = vld [vmem:[%s1570_s8 + $0x10] sm:$0xff]  ;;  %v1591_v8 = vadd.f32 %v465_v4, %v433_v2  ;;  %v462_v9 = vld [vmem:[%s1577_s17] sm:$0xff]  ;;  %v435_v11 = vld [vmem:[%s1570_s8 + $0x28] sm:$0xff]  ;;  %p1987_p12 = scmp.ne.s32.totalorder %s1976_s14, 0 }
  0x5d   : > { %v464_v10 = vld [vmem:[%s1577_s17 + $0x10] sm:$0xff]  ;;  %v1596_v12 = vadd.f32 %v462_v9, %v430_v6  ;;  %v437_v14 = vld [vmem:[%s1570_s8 + $0x38] sm:$0xff]  ;;  %v467_v15 = vld [vmem:[%s1577_s17 + $0x28] sm:$0xff] }
  0x5e   : > { %v1598_v13 = vadd.f32 %v464_v10, %v432_v7  ;;  %v469_v16 = vld [vmem:[%s1577_s17 + $0x38] sm:$0xff]  ;;  %v531_v17 = vpack.c.bf16 %v1591_v8, %v1587_v5  ;;  %v1605_v18 = vadd.f32 %v467_v15, %v435_v11  ;;  %v434_v20 = vld [vmem:[%s1570_s8 + $0x20] sm:$0xff]  ;;  %v436_v21 = vld [vmem:[%s1570_s8 + $0x30] sm:$0xff] }
  0x5f   : > { %v1607_v19 = vadd.f32 %v469_v16, %v437_v14  ;;  %v466_v22 = vld [vmem:[%s1577_s17 + $0x20] sm:$0xff]  ;;  %v468_v24 = vld [vmem:[%s1577_s17 + $0x30] sm:$0xff]  ;;  %v439_v26 = vld [vmem:[%s1570_s8 + $0x48] sm:$0xff] }
  0x60   : > { %v530_v23 = vpack.c.bf16 %v1598_v13, %v1596_v12  ;;  %v1615_v25 = vadd.f32 %v466_v22, %v434_v20  ;;  %v441_v27 = vld [vmem:[%s1570_s8 + $0x58] sm:$0xff]  ;;  %582 = vmatprep.subr.bf16.mxu0 %v531_v17  ;;  %1110 = vmatprep.subr.bf16.mxu1 %v531_v17  ;;  %v1621_v29 = vadd.f32 %v468_v24, %v436_v21  ;;  %v471_v30 = vld [vmem:[%s1577_s17 + $0x48] sm:$0xff]  ;;  %v438_v32 = vld [vmem:[%s1570_s8 + $0x40] sm:$0xff] }
  0x61   : > { %v533_v28 = vpack.c.bf16 %v1607_v19, %v1605_v18  ;;  %v473_v31 = vld [vmem:[%s1577_s17 + $0x58] sm:$0xff]  ;;  %v1626_v33 = vadd.f32 %v471_v30, %v439_v26  ;;  %v440_v35 = vld [vmem:[%s1570_s8 + $0x50] sm:$0xff]  ;;  %v470_v36 = vld [vmem:[%s1577_s17 + $0x40] sm:$0xff] }
  0x62   : > { %583 = vmatpush1.bf16.msra.mxu0 %v530_v23  ;;  %1118 = vmatpush1.bf16.msra.mxu1 %v530_v23  ;;  %v1628_v34 = vadd.f32 %v473_v31, %v441_v27  ;;  %v472_v37 = vld [vmem:[%s1577_s17 + $0x50] sm:$0xff]  ;;  %v532_v38 = vpack.c.bf16 %v1621_v29, %v1615_v25  ;;  %v1635_v39 = vadd.f32 %v470_v36, %v438_v32  ;;  %v443_v41 = vld [vmem:[%s1570_s8 + $0x68] sm:$0xff]  ;;  %v445_v42 = vld [vmem:[%s1570_s8 + $0x78] sm:$0xff] }
  0x63   : > { %584 = vmatprep.subr.bf16.mxu0 %v533_v28  ;;  %1111 = vmatprep.subr.bf16.mxu1 %v533_v28  ;;  %v1637_v40 = vadd.f32 %v472_v37, %v440_v35  ;;  %v475_v43 = vld [vmem:[%s1577_s17 + $0x68] sm:$0xff]  ;;  %v477_v45 = vld [vmem:[%s1577_s17 + $0x78] sm:$0xff]  ;;  %v442_v47 = vld [vmem:[%s1570_s8 + $0x60] sm:$0xff] }
  0x64   : > { %v535_v44 = vpack.c.bf16 %v1628_v34, %v1626_v33  ;;  %v1645_v46 = vadd.f32 %v475_v43, %v443_v41  ;;  %v444_v48 = vld [vmem:[%s1570_s8 + $0x70] sm:$0xff]  ;;  %v1649_v49 = vadd.f32 %v477_v45, %v445_v42  ;;  %v474_v50 = vld [vmem:[%s1577_s17 + $0x60] sm:$0xff]  ;;  %v447_v52 = vld [vmem:[%s1570_s8 + $0x88] sm:$0xff] }
  0x65   : > { %v476_v51 = vld [vmem:[%s1577_s17 + $0x70] sm:$0xff]  ;;  %v534_v53 = vpack.c.bf16 %v1637_v40, %v1635_v39  ;;  %v1656_v54 = vadd.f32 %v474_v50, %v442_v47  ;;  %v449_v56 = vld [vmem:[%s1570_s8 + $0x98] sm:$0xff]  ;;  %v479_v57 = vld [vmem:[%s1577_s17 + $0x88] sm:$0xff] }
  0x66   : > { %585 = vmatpush1.bf16.msra.mxu0 %v532_v38  ;;  %1119 = vmatpush1.bf16.msra.mxu1 %v532_v38  ;;  %v1658_v55 = vadd.f32 %v476_v51, %v444_v48  ;;  %v481_v58 = vld [vmem:[%s1577_s17 + $0x98] sm:$0xff]  ;;  %v537_v59 = vpack.c.bf16 %v1649_v49, %v1645_v46  ;;  %v1665_v60 = vadd.f32 %v479_v57, %v447_v52  ;;  %v446_v62 = vld [vmem:[%s1570_s8 + $0x80] sm:$0xff]  ;;  %v448_v63 = vld [vmem:[%s1570_s8 + $0x90] sm:$0xff] }
  0x67   : > { %586 = vmatprep.subr.bf16.mxu0 %v535_v44  ;;  %1112 = vmatprep.subr.bf16.mxu1 %v535_v44  ;;  %v1667_v61 = vadd.f32 %v481_v58, %v449_v56  ;;  %v478_v0 = vld [vmem:[%s1577_s17 + $0x80] sm:$0xff]  ;;  %v480_v1 = vld [vmem:[%s1577_s17 + $0x90] sm:$0xff]  ;;  %v451_v2 = vld [vmem:[%s1570_s8 + $0xa8] sm:$0xff] }
  0x68   : > { %v453_v3 = vld [vmem:[%s1570_s8 + $0xb8] sm:$0xff]  ;;  %v483_v4 = vld [vmem:[%s1577_s17 + $0xa8] sm:$0xff]  ;;  %v536_v7 = vpack.c.bf16 %v1658_v55, %v1656_v54  ;;  %v1679_v9 = vadd.f32 %v478_v0, %v446_v62  ;;  %v1681_v10 = vadd.f32 %v480_v1, %v448_v63  ;;  %v450_v11 = vld [vmem:[%s1570_s8 + $0xa0] sm:$0xff] }
  0x69   : > { %v485_v6 = vld [vmem:[%s1577_s17 + $0xb8] sm:$0xff]  ;;  %v452_v14 = vld [vmem:[%s1570_s8 + $0xb0] sm:$0xff]  ;;  %v539_v15 = vpack.c.bf16 %v1667_v61, %v1665_v60  ;;  %v1687_v16 = vadd.f32 %v483_v4, %v451_v2  ;;  %v482_v20 = vld [vmem:[%s1577_s17 + $0xa0] sm:$0xff] }
  0x6a   : > { %587 = vmatpush1.bf16.msra.mxu0 %v534_v53  ;;  %1120 = vmatpush1.bf16.msra.mxu1 %v534_v53  ;;  %v1689_v17 = vadd.f32 %v485_v6, %v453_v3  ;;  %v484_v21 = vld [vmem:[%s1577_s17 + $0xb0] sm:$0xff]  ;;  %v455_v22 = vld [vmem:[%s1570_s8 + $0xc8] sm:$0xff]  ;;  %v457_v23 = vld [vmem:[%s1570_s8 + $0xd8] sm:$0xff]  ;;  %v538_v28 = vpack.c.bf16 %v1681_v10, %v1679_v9  ;;  %v1700_v30 = vadd.f32 %v482_v20, %v450_v11 }
  0x6b   : > { %588 = vmatprep.subr.bf16.mxu0 %v537_v59  ;;  %1113 = vmatprep.subr.bf16.mxu1 %v537_v59  ;;  %v487_v24 = vld [vmem:[%s1577_s17 + $0xc8] sm:$0xff]  ;;  %v489_v26 = vld [vmem:[%s1577_s17 + $0xd8] sm:$0xff]  ;;  %v454_v27 = vld [vmem:[%s1570_s8 + $0xc0] sm:$0xff]  ;;  %v1702_v31 = vadd.f32 %v484_v21, %v452_v14 }
  0x6c   : > { %v456_v32 = vld [vmem:[%s1570_s8 + $0xd0] sm:$0xff]  ;;  %v486_v35 = vld [vmem:[%s1577_s17 + $0xc0] sm:$0xff]  ;;  %v541_v37 = vpack.c.bf16 %v1689_v17, %v1687_v16  ;;  %v1709_v38 = vadd.f32 %v487_v24, %v455_v22  ;;  %v1711_v41 = vadd.f32 %v489_v26, %v457_v23  ;;  %v459_v42 = vld [vmem:[%s1570_s8 + $0xe8] sm:$0xff] }
  0x6d   : > { %v488_v36 = vld [vmem:[%s1577_s17 + $0xd0] sm:$0xff]  ;;  %v461_v43 = vld [vmem:[%s1570_s8 + $0xf8] sm:$0xff]  ;;  %v491_v44 = vld [vmem:[%s1577_s17 + $0xe8] sm:$0xff]  ;;  %v540_v47 = vpack.c.bf16 %v1702_v31, %v1700_v30  ;;  %v1719_v48 = vadd.f32 %v486_v35, %v454_v27 }
  0x6e   : > { %589 = vmatpush1.bf16.msra.mxu0 %v536_v7  ;;  %1121 = vmatpush1.bf16.msra.mxu1 %v536_v7  ;;  %v493_v45 = vld [vmem:[%s1577_s17 + $0xf8] sm:$0xff]  ;;  %v1721_v50 = vadd.f32 %v488_v36, %v456_v32  ;;  %v458_v51 = vld [vmem:[%s1570_s8 + $0xe0] sm:$0xff]  ;;  %v548_v53 = vld [vmem:[%s1961_s3 + $0x10] sm:$0xff]  ;;  %v543_v56 = vpack.c.bf16 %v1711_v41, %v1709_v38  ;;  %v1732_v57 = vadd.f32 %v491_v44, %v459_v42 }
  0x6f   : > { %590 = vmatprep.subr.bf16.mxu0 %v539_v15  ;;  %1114 = vmatprep.subr.bf16.mxu1 %v539_v15  ;;  %v546_v52 = vld [vmem:[%s1961_s3] sm:$0xff]  ;;  %v1734_v58 = vadd.f32 %v493_v45, %v461_v43  ;;  %v460_v59 = vld [vmem:[%s1570_s8 + $0xf0] sm:$0xff]  ;;  %v547_v0 = vld [vmem:[%s1961_s3 + $0x8] sm:$0xff]  ;;  %s1082_s8 = sshll.u32 %s1566_s19, 5 }
  0x70   : > { %v490_v62 = vld [vmem:[%s1577_s17 + $0xe0] sm:$0xff]  ;;  %v492_v63 = vld [vmem:[%s1577_s17 + $0xf0] sm:$0xff]  ;;  %552 = vperm.xlu0 %1198, %v546_v52   ;;  %562 = vperm.xlu1 %1199, %v548_v53   ;;  %v549_v1 = vld [vmem:[%s1961_s3 + $0x18] sm:$0xff]  ;;  %v542_v2 = vpack.c.bf16 %v1721_v50, %v1719_v48  ;;  %s1782_s15 = scalar_lea.vmem [#allocation7], %s1082_s8  ;;  %s1894_s8 = scalar_lea.hbm %s1962_s4, %s1109_s30 }
  0x71   : > { %v1747_v3 = vadd.f32 %v490_v62, %v458_v51  ;;  %v1749_v4 = vadd.f32 %v492_v63, %v460_v59  ;;  %v545_v6 = vpack.c.bf16 %v1734_v58, %v1732_v57  ;;  %v1200_v11 = vld [vmem:[%s1960_s2] sm:$0xff]   ;;  %v1201_v14 = vld [vmem:[%s1960_s2 + $0x8] sm:$0xff]   ;;  %s1826_s17 = scalar_select %p402_p0, %s1340_s27, 1 }
  0x72   : > { %591 = vmatpush1.bf16.msra.mxu0 %v538_v28  ;;  %1122 = vmatpush1.bf16.msra.mxu1 %v538_v28  ;;  %s824_s12 = sshll.u32 %s1782_s15, 4  ;;  %s1886_s12 = int_to_ptr.vmem [resolvable:$true] %s824_s12 }
  0x73   : > { %592 = vmatprep.subr.bf16.mxu0 %v541_v37  ;;  %1115 = vmatprep.subr.bf16.mxu1 %v541_v37  ;;  %v544_v7 = vpack.c.bf16 %v1749_v4, %v1747_v3  ;;  %s1102_s13 = sshll.u32 %s1826_s17, 5  ;;  %s1104_s22 = sshll.u32 %s1826_s17, 7 }
  0x74   : > { %557 = vperm.xlu0 %1198, %v547_v0   ;;  %567 = vperm.xlu1 %1199, %v549_v1   ;;  %s1834_s18 = scalar_lea.vmem %s1963_s5, %s1102_s13  ;;  %s1840_s10 = scalar_lea.vmem %s1965_s7, %s1104_s22 }
  0x75   : > { %s1262_s21 = scalar_lea.vmem %s1886_s12, 512 }
  0x76   : > { %593 = vmatpush1.bf16.msra.mxu0 %v540_v47  ;;  %1123 = vmatpush1.bf16.msra.mxu1 %v540_v47  ;;  %p1263_p3 = scmp.ne.s32.totalorder %s1886_s12, %s1262_s21 }
  0x77   : > { %594 = vmatprep.subr.bf16.mxu0 %v543_v56  ;;  %1116 = vmatprep.subr.bf16.mxu1 %v543_v56 }
  0x78   : > { %p1264_p13 = pnand %p1263_p3, %p1987_p12 }
  0x7a   : > { %595 = vmatpush1.bf16.msra.mxu0 %v542_v2  ;;  %1124 = vmatpush1.bf16.msra.mxu1 %v542_v2  ;;  %v717_v2 = vadd.f32 %v1587_v5, %v1596_v12  ;;  %v726_v5 = vadd.f32 %v1607_v19, %v1621_v29  ;;  %v735_v12 = vadd.f32 %v1645_v46, %v1656_v54  ;;  %p1265_p7 = pneg %p1264_p13 }
  0x7b   : > { %596 = vmatprep.subr.bf16.mxu0 %v545_v6  ;;  %1117 = vmatprep.subr.bf16.mxu1 %v545_v6  ;;  %v723_v6 = vadd.f32 %v1605_v18, %v1615_v25  ;;  %v732_v18 = vadd.f32 %v1628_v34, %v1637_v40  ;;  %v747_v19 = vadd.f32 %v1687_v16, %v1700_v30 }
  0x7c   : > { %v744_v25 = vadd.f32 %v1667_v61, %v1681_v10  ;;  %v753_v29 = vadd.f32 %v1709_v38, %v1719_v48  ;;  %v756_v34 = vadd.f32 %v1711_v41, %v1721_v50 }
  0x7e   : > { %597 = vmatpush1.bf16.msra.mxu0 %v544_v7  ;;  %1125 = vmatpush1.bf16.msra.mxu1 %v544_v7 }
  0x81   : > { %615 = vmatmul.mubr.bf16.vlgmr.msra.gmra.mrb[0].mxu0 %v1200_v11  ;;  %625 = vmatmul.mubr.bf16.vlgmr.msra.gmra.mrb[0].mxu1 %v1201_v14  ;;  %v720_v11 = vadd.f32 %v1591_v8, %v1598_v13  ;;  %v729_v14 = vadd.f32 %v1626_v33, %v1635_v39  ;;  %v741_v8 = vadd.f32 %v1665_v60, %v1679_v9 }
  0x82   : > { %v738_v13 = vadd.f32 %v1649_v49, %v1658_v55  ;;  %v750_v33 = vadd.f32 %v1689_v17, %v1702_v31 }
  0xef   : > { %v553_v15 = vpop.permute.xlu0 %552  ;;  %v563_v20 = vpop.permute.xlu1 %562 }
  0xf3   : > { %v558_v21 = vpop.permute.xlu0 %557  ;;  %v568_v22 = vpop.permute.xlu1 %567 }
 0x154   : > { %v616_v23 = vpop.f32.mrb[0].mxu0  ;;  %v626_v24 = vpop.f32.mrb[0].mxu1 }
 0x155   : > { %v1762_v26 = vadd.f32 %v616_v23, %v553_v15  ;;  %v618_v27 = vpop.f32.mrb[1].mxu0  ;;  %v1764_v28 = vadd.f32 %v626_v24, %v563_v20  ;;  %v628_v32 = vpop.f32.mrb[1].mxu1 }
 0x156   : > { %v1766_v35 = vadd.f32 %v618_v27, %v553_v15  ;;  %v620_v36 = vpop.f32.mrb[2].mxu0  ;;  %v1768_v37 = vadd.f32 %v628_v32, %v563_v20  ;;  %v630_v42 = vpop.f32.mrb[2].mxu1 }
 0x157   : > { %v1770_v43 = vadd.f32 %v620_v36, %v558_v21  ;;  %v622_v44 = vpop.f32.mrb[3].mxu0  ;;  %v1772_v45 = vadd.f32 %v630_v42, %v568_v22  ;;  %v632_v47 = vpop.f32.mrb[3].mxu1 }
 0x158   : > { %v1105_v51 = vpack.c.bf16 %v1766_v35, %v1762_v26  ;;  %v1107_v52 = vpack.c.bf16 %v1768_v37, %v1764_v28  ;;  %v623_v53 = vadd.f32 %v622_v44, %v558_v21  ;;  %v1778_v56 = vadd.f32 %v632_v47, %v568_v22 }
 0x159   : > { %v663_v59 = vadd.f32 %v1766_v35, %v1762_v26  ;;  %v669_v1 = vadd.f32 %v1768_v37, %v1764_v28 }
 0x15a   : > { %659 = vst [vmem:[%s1782_s15] sm:$0xff] %v1105_v51  ;;  %661 = vst [vmem:[%s1782_s15 + $0x10] sm:$0xff] %v1107_v52  ;;  %v1106_v62 = vpack.c.bf16 %v623_v53, %v1770_v43  ;;  %v1108_v63 = vpack.c.bf16 %v1778_v56, %v1772_v45  ;;  %v666_v0 = vadd.f32 %v623_v53, %v1770_v43 }
 0x15b   : > { %664 = vadd.xlane.f32.xlu0 %v663_v59  ;;  %v672_v7 = vadd.f32 %v1778_v56, %v1772_v45 }
 0x15c   : > { %660 = vst [vmem:[%s1782_s15 + $0x8] sm:$0xff] %v1106_v62  ;;  %662 = vst [vmem:[%s1782_s15 + $0x18] sm:$0xff] %v1108_v63  ;;  %667 = vadd.xlane.f32.xlu1 %v666_v0  ;;  %s1355_s15 = smov [#allocation7]  }
 0x15f   : > { %670 = vadd.xlane.f32.xlu0 %v669_v1 }
 0x160   : > { %718 = vadd.xlane.f32.xlu1 %v717_v2 }
 0x163   : > { %673 = vadd.xlane.f32.xlu0 %v672_v7 }
 0x164   : > { %724 = vadd.xlane.f32.xlu1 %v723_v6 }
 0x167   : > { %721 = vadd.xlane.f32.xlu0 %v720_v11 }
 0x168   : > { %730 = vadd.xlane.f32.xlu1 %v729_v14 }
 0x16b   : > { %727 = vadd.xlane.f32.xlu0 %v726_v5 }
 0x16c   : > { %736 = vadd.xlane.f32.xlu1 %v735_v12 }
 0x16f   : > { %733 = vadd.xlane.f32.xlu0 %v732_v18 }
 0x170   : > { %742 = vadd.xlane.f32.xlu1 %v741_v8 }
 0x173   : > { %739 = vadd.xlane.f32.xlu0 %v738_v13 }
 0x174   : > { %748 = vadd.xlane.f32.xlu1 %v747_v19 }
 0x177   : > { %745 = vadd.xlane.f32.xlu0 %v744_v25 }
 0x178   : > { %754 = vadd.xlane.f32.xlu1 %v753_v29 }
 0x17b   : > { %751 = vadd.xlane.f32.xlu0 %v750_v33 }
 0x17f   : > { %757 = vadd.xlane.f32.xlu0 %v756_v34 }
 0x1e8   : > { %v665_v39 = vpop.xlane.xlu0 %664 }
 0x1e9   : > { %v676_v40 = vmul.f32 0.00390625, %v665_v39  ;;  %v668_v46 = vpop.xlane.xlu1 %667 }
 0x1ea   : > { %v677_v49 = vmul.f32 0.00390625, %v668_v46 }
 0x1eb   : > { %689 = vst.msk [vmem:[%s1834_s18] sm:$0xff] %vm688_vm0, %v676_v40  ;;  %v680_v54 = vsub.f32 %v1762_v26, %v676_v40  ;;  %v681_v55 = vsub.f32 %v1766_v35, %v676_v40 }
 0x1ec   : > { %690 = vst.msk [vmem:[%s1834_s18 + $0x8] sm:$0xff] %vm688_vm0, %v677_v49  ;;  %v671_v60 = vpop.xlane.xlu0 %670  ;;  %v682_v61 = vsub.f32 %v1770_v43, %v677_v49  ;;  %v683_v9 = vsub.f32 %v623_v53, %v677_v49 }
 0x1ed   : > { %v678_v10 = vmul.f32 0.00390625, %v671_v60  ;;  %v693_v16 = vmul.f32 %v680_v54, %v680_v54  ;;  %v694_v17 = vmul.f32 %v681_v55, %v681_v55  ;;  %v719_v30 = vpop.xlane.xlu1 %718 }
 0x1ee   : > { %v695_v31 = vmul.f32 %v682_v61, %v682_v61  ;;  %v696_v38 = vmul.f32 %v683_v9, %v683_v9  ;;  %765 = vst.msk [vmem:[%s1840_s10] sm:$0xff] %vm688_vm0, %v719_v30 }
 0x1ef   : > { %691 = vst.msk [vmem:[%s1834_s18 + $0x10] sm:$0xff] %vm688_vm0, %v678_v10  ;;  %v701_v41 = vadd.f32 %v694_v17, %v693_v16  ;;  %v684_v48 = vsub.f32 %v1764_v28, %v678_v10  ;;  %v685_v50 = vsub.f32 %v1768_v37, %v678_v10  ;;  %v759_v37 = vadd.f32 %v1732_v57, %v1747_v3 }
 0x1f0   : > { %v674_v15 = vpop.xlane.xlu0 %673  ;;  %v704_v20 = vadd.f32 %v696_v38, %v695_v31 }
 0x1f1   : > { %v679_v21 = vmul.f32 0.00390625, %v674_v15  ;;  %702 = vadd.xlane.f32.xlu1 %v701_v41  ;;  %v697_v22 = vmul.f32 %v684_v48, %v684_v48  ;;  %v698_v23 = vmul.f32 %v685_v50, %v685_v50  ;;  %v725_v24 = vpop.xlane.xlu1 %724 }
 0x1f2   : > { %705 = vadd.xlane.f32.xlu0 %v704_v20  ;;  %767 = vst.msk [vmem:[%s1840_s10 + $0x10] sm:$0xff] %vm688_vm0, %v725_v24 }
 0x1f3   : > { %692 = vst.msk [vmem:[%s1834_s18 + $0x18] sm:$0xff] %vm688_vm0, %v679_v21  ;;  %v707_v26 = vadd.f32 %v698_v23, %v697_v22  ;;  %v686_v27 = vsub.f32 %v1772_v45, %v679_v21  ;;  %v687_v28 = vsub.f32 %v1778_v56, %v679_v21  ;;  %v762_v45 = vadd.f32 %v1734_v58, %v1749_v4  ;;  %s1266_s18 = sshll.u32 %s1355_s15, 4  ;;  %s1267_s18 = int_to_ptr.vmem [resolvable:$false] %s1266_s18 }
 0x1f4   : > { %v722_v32 = vpop.xlane.xlu0 %721  ;;  %s1268_s22 = scalar_lea.vmem %s1267_s18, 1024  ;;  %p1269_p10 = scmp.lt.s32.totalorder %s1886_s12, %s1267_s18 }
 0x1f5   : > { %708 = vadd.xlane.f32.xlu1 %v707_v26  ;;  %v699_v35 = vmul.f32 %v686_v27, %v686_v27  ;;  %v700_v36 = vmul.f32 %v687_v28, %v687_v28  ;;  %766 = vst.msk [vmem:[%s1840_s10 + $0x8] sm:$0xff] %vm688_vm0, %v722_v32  ;;  %v731_v42 = vpop.xlane.xlu1 %730  ;;  %p1270_p9 = scmp.lt.s32.totalorder %s1268_s22, %s1262_s21 }
 0x1f6   : > { %769 = vst.msk [vmem:[%s1840_s10 + $0x20] sm:$0xff] %vm688_vm0, %v731_v42 }
 0x1f7   : > { %v710_v43 = vadd.f32 %v700_v36, %v699_v35  ;;  %p1271_p11 = por %p1270_p9, %p1269_p10 }
 0x1f8   : > { %v728_v44 = vpop.xlane.xlu0 %727 }
 0x1f9   : > { %711 = vadd.xlane.f32.xlu0 %v710_v43  ;;  %760 = vadd.xlane.f32.xlu1 %v759_v37  ;;  %768 = vst.msk [vmem:[%s1840_s10 + $0x18] sm:$0xff] %vm688_vm0, %v728_v44  ;;  %v737_v57 = vpop.xlane.xlu1 %736  ;;  %p1272_p1 = pnand %p1271_p11, %p1265_p7 }
 0x1fa   : > { %771 = vst.msk [vmem:[%s1840_s10 + $0x30] sm:$0xff] %vm688_vm0, %v737_v57 }
 0x1fc   : > { %v734_v3 = vpop.xlane.xlu0 %733 }
 0x1fd   : > { %763 = vadd.xlane.f32.xlu0 %v762_v45  ;;  %770 = vst.msk [vmem:[%s1840_s10 + $0x28] sm:$0xff] %vm688_vm0, %v734_v3  ;;  %v743_v47 = vpop.xlane.xlu1 %742 }
 0x1fe   : > { %773 = vst.msk [vmem:[%s1840_s10 + $0x40] sm:$0xff] %vm688_vm0, %v743_v47 }
 0x200   : > { %v740_v51 = vpop.xlane.xlu0 %739 }
 0x201   : > { %772 = vst.msk [vmem:[%s1840_s10 + $0x38] sm:$0xff] %vm688_vm0, %v740_v51  ;;  %v749_v58 = vpop.xlane.xlu1 %748 }
 0x202   : > { %775 = vst.msk [vmem:[%s1840_s10 + $0x50] sm:$0xff] %vm688_vm0, %v749_v58 }
 0x204   : > { %v746_v4 = vpop.xlane.xlu0 %745 }
 0x205   : > { %774 = vst.msk [vmem:[%s1840_s10 + $0x48] sm:$0xff] %vm688_vm0, %v746_v4  ;;  %v755_v52 = vpop.xlane.xlu1 %754 }
 0x206   : > { %777 = vst.msk [vmem:[%s1840_s10 + $0x60] sm:$0xff] %vm688_vm0, %v755_v52 }
 0x208   : > { %v752_v53 = vpop.xlane.xlu0 %751 }
 0x209   : > { %776 = vst.msk [vmem:[%s1840_s10 + $0x58] sm:$0xff] %vm688_vm0, %v752_v53 }
 0x20c   : > { %v758_v56 = vpop.xlane.xlu0 %757 }
 0x20d   : > { %1275 = shalt.err (!%p1272_p1)
}
 0x20e   : > { %s1276_s27 = scalar_lea.hbm %s1894_s8, 512  ;;  %s1280_s30 = scalar_lea.hbm %s1962_s4, 1024 }
 0x20f   : > { %p1277_p6 = scmp.ne.s32.totalorder %s1894_s8, %s1276_s27  ;;  %p1281_p4 = scmp.lt.u32.totalorder %s1894_s8, %s1962_s4 }
 0x210   : > { %p1282_p8 = scmp.lt.u32.totalorder %s1280_s30, %s1276_s27  ;;  %p1284_p3 = scmp.lt.u32.totalorder %s1276_s27, %s1894_s8 }
 0x211   : > { %p1278_p2 = pnand %p1277_p6, %p1987_p12 }
 0x212   : > { %p1283_p0 = por %p1282_p8, %p1281_p4 }
 0x213   : > { %p1279_p5 = pneg %p1278_p2 }
 0x214   : > { %p1285_p13 = por %p1284_p3, %p1283_p0 }
 0x216   : > { %p1286_p7 = pnand %p1285_p13, %p1279_p5 }
 0x218   : > { %1289 = shalt.err (!%p1286_p7)
}
 0x219   : > { %s1356_s21 = smov 128   ;;  %s1357_s15 = smov 8   ;;  %778 = vst.msk [vmem:[%s1840_s10 + $0x68] sm:$0xff] %vm688_vm0, %v758_v56 }
 0x21a   : > { %1130 = dma.vmem_to_hbm [thread:$0]  (%p1987_p12), %s1886_s12, 512, %s1894_s8, %s782_s11, %s1356_s21, %s1356_s21, %s1357_s15  }
 0x21b   : > { %s419_s27 = scalar_lea.vmem %s1964_s6, %s1102_s13 }
 0x27e   : > { %v703_v59 = vpop.xlane.xlu1 %702 }
 0x27f   : > { %713 = vst.msk [vmem:[%s419_s27] sm:$0xff] %vm688_vm0, %v703_v59  ;;  %v706_v62 = vpop.xlane.xlu0 %705 }
 0x280   : > { %714 = vst.msk [vmem:[%s419_s27 + $0x8] sm:$0xff] %vm688_vm0, %v706_v62 }
 0x282   : > { %v709_v63 = vpop.xlane.xlu1 %708 }
 0x283   : > { %715 = vst.msk [vmem:[%s419_s27 + $0x10] sm:$0xff] %vm688_vm0, %v709_v63 }
 0x286   : > { %v712_v0 = vpop.xlane.xlu0 %711  ;;  %v761_v1 = vpop.xlane.xlu1 %760 }
 0x287   : > { %716 = vst.msk [vmem:[%s419_s27 + $0x18] sm:$0xff] %vm688_vm0, %v712_v0  ;;  %779 = vst.msk [vmem:[%s1840_s10 + $0x70] sm:$0xff] %vm688_vm0, %v761_v1 }
 0x28a   : > { %v764_v2 = vpop.xlane.xlu0 %763 }
 0x28b   : > { %780 = vst.msk [vmem:[%s1840_s10 + $0x78] sm:$0xff] %vm688_vm0, %v764_v2 }
 0x28c PF: > { %s848_s14 = sand.u32 1, %s1328_s24   ;;  %p1988_p12 = scmp.ne.s32.totalorder %s1978_s16, 0 }
 0x28d   : > { %p1989_p10 = scmp.ge.s32.totalorder %s1348_s29, 2  ;;  %s849_s19 = scalar_lea.sflag [#allocation4], %s848_s14 }
 0x28f   : > { %p1140_p9 = pnand %p1989_p10, %p1988_p12 }
 0x291   : > { %1323 = dma.done.wait (!%p1140_p9), %s849_s19, 512  }
 0x292   : > { %1325 = vsyncadd (!%p1140_p9), %s849_s19, 4294966784  ;;  %s27_s29 = sadd.s32 1, %s1348_s29   ;;  %s1990_s17 = sld [smem:[#allocation12_spill]] }
 0x293   : > { %p24_p11 = scmp.ge.s32.totalorder %s27_s29, 4   ;;  %s1991_s13 = sld [smem:[#allocation11_spill]] }
 0x294   : > { %s1992_s24 = smov %s1332_s25  ;;  %s1993_s25 = smov %s1336_s26 }
 0x295   : > { %s1995_s27 = smov %s1344_s28  ;;  %26 = sbr.rel (!%p24_p11) target bundleno = 10 (0xa), region = 130 }
 0x298   : > { %s1994_s26 = smov %s1990_s17 }
 0x299   : > { %s1996_s28 = smov %s1991_s13 }
 0x29c   :  { %890 = vsyncpa [#allocation3], 1 }
 0x29d   :  { %892 = vsyncpa [#allocation3 + $0x1], 1 }
 0x29e   :  { %893 = vsyncpa [#allocation6], 1 }
 0x29f   :  { %895 = vsyncpa [#allocation6 + $0x1], 1 }
 0x2a0   :  { %896 = vsyncpa [#allocation4], 1 }
 0x2a1   :  { %898 = vsyncpa [#allocation4 + $0x1], 1 }

</bundles_post_ra>
